<compile_context>
chip_gen: v5e
topology: v5e:2x2
jax: 0.10.0
libtpu: 0.0.40
codegen_flags: <defaults>
</compile_context>

<pallas_src>
import functools

import jax
import jax.numpy as jnp
from jax import lax
from jax.experimental import pallas as pl
from jax.experimental.pallas import tpu as pltpu


def _sdp_kernel(*refs, causal, offset, q_tile, q_axis, sk_valid, has_mask):
    """One grid step = one query tile of one (batch, head) slice.

    q_ref   : (1, TQ, D)   query tile
    k_ref   : (1, Skp, D)  full (padded) keys for this head
    v_ref   : (1, Skp, D)  full (padded) values for this head
    mask_ref: (1, TQ, Skp) additive ctx.mask tile (only when has_mask)
    o_ref   : (1, TQ, D)   attention output tile
    w_ref   : (1, TQ, Skp) attention weights tile (ctx.output.attention)
    """
    if has_mask:
        q_ref, k_ref, v_ref, mask_ref, o_ref, w_ref = refs
    else:
        q_ref, k_ref, v_ref, o_ref, w_ref = refs
        mask_ref = None

    q = q_ref[0]          # (TQ, D), source dtype (bf16/f32) -> MXU native
    k = k_ref[0]          # (Skp, D)
    v = v_ref[0]          # (Skp, D)

    # attn_weight = q @ k^T  (reference applies NO 1/sqrt(D) scaling).
    # Contract on the last dim of both operands: no explicit k.T transpose,
    # f32 accumulation via preferred_element_type.
    scores = lax.dot_general(
        q, k,
        dimension_numbers=(((1,), (1,)), ((), ())),
        preferred_element_type=jnp.float32,
    )                                                   # (TQ, Skp) f32
    tq, skp = scores.shape

    neg = jnp.finfo(jnp.float32).min
    keep = None
    if causal:
        # Global query row index of this tile; bias[:, :, klen-qlen:klen, :klen].
        row0 = pl.program_id(q_axis) * q_tile
        row = lax.broadcasted_iota(jnp.int32, (tq, skp), 0) + row0
        col = lax.broadcasted_iota(jnp.int32, (tq, skp), 1)
        keep = col <= row + offset
    if sk_valid < skp:
        # Keys were padded to a lane-dense multiple of 128: mask padded columns.
        col = lax.broadcasted_iota(jnp.int32, (tq, skp), 1)
        kvalid = col < sk_valid
        keep = kvalid if keep is None else jnp.logical_and(keep, kvalid)
    if keep is not None:
        if has_mask:
            # Mask arrives in the input dtype; upcast here. Fusing the additive
            # mask into the where also avoids the finfo.min + mask overflow.
            scores = jnp.where(keep, scores + mask_ref[0].astype(jnp.float32), neg)
        else:
            scores = jnp.where(keep, scores, neg)
    # NOTE: reference only applies ctx.mask when the causal bias exists.

    # Softmax over keys; EUP reciprocal keeps the divide off the VPU.
    m = jnp.max(scores, axis=-1, keepdims=True)
    e = jnp.exp(scores - m)
    denom = jnp.sum(e, axis=-1, keepdims=True)
    w = e * pl.reciprocal(denom, approx=False)

    # TODO(synk): attn_dropout (nn.Dropout) skipped -- eval-mode identity.
    # TODO(synk): head_mask is None in the default Context; not implemented.
    wv = w.astype(v.dtype)                               # single cast, reused twice
    w_ref[0] = wv if w_ref.dtype == v.dtype else wv.astype(w_ref.dtype)
    o_ref[0] = jnp.dot(wv, v,
                       preferred_element_type=jnp.float32).astype(o_ref.dtype)


def _round_up(x, m):
    return (x + m - 1) // m * m


def _pick_q_tile(sq, target, align):
    """Aligned q tile <= target; prefers a divisor of sq, never returns sq for
    large sq (the wrapper pads Sq to a tile multiple instead)."""
    target = max(align, (target // align) * align)
    if sq <= target:
        return _round_up(sq, align)
    for t in range(target, align - 1, -align):
        if sq % t == 0:
            return t
    return target


def scaled_dot_product_selector(q, k, v, attn_mask=None, *, max_seq=None, q_tile=None):
    """JAX/Pallas equivalent of ScaledDotProductSelector.forward.

    q, k, v   : (B, H, S, D) arrays (PyTorch layout).
    attn_mask : optional additive mask broadcastable to (B, H, Sq, Sk)
                (ctx.mask). NOTE: like the reference, it is only applied when
                max_seq is not None (the causal bias branch).
    max_seq   : if not None, causal masking is applied (matches the registered
                tril bias buffer in the PyTorch module).
    Returns (attn_output (B,H,Sq,D), attn_weights (B,H,Sq,Sk)).
    """
    B, H, Sq, D = q.shape
    Sk = k.shape[2]
    BH = B * H
    causal = max_seq is not None
    if causal:
        assert max_seq >= Sk and max_seq >= Sq, "max_seq must cover the sequence"
    offset = Sk - Sq                       # klen - qlen
    has_mask = causal and attn_mask is not None

    dtype = q.dtype
    db = jnp.dtype(dtype).itemsize
    # bf16 packs two rows per sublane -> 16-row alignment; 32 for 8-bit types.
    align = 8 if db >= 4 else (16 if db == 2 else 32)

    # ---- generation-aware VMEM budget & tile target -------------------------
    try:
        info = pltpu.get_tpu_info()
        vmem_cap = int(getattr(info, "vmem_capacity_bytes", 64 * 1024 * 1024))
    except Exception:
        vmem_cap = 64 * 1024 * 1024
    vmem_limit = max(32 * 1024 * 1024, int(vmem_cap * 0.75))
    if q_tile is None:
        # 128 MiB parts (v5e/v6e): big tiles amortize per-step overhead;
        # 64 MiB parts (v7x): smaller tiles + more grid steps for 2 TCs.
        q_tile = 512 if vmem_cap >= 96 * 1024 * 1024 else 128

    Skp = _round_up(Sk, 128)               # lane-dense weights output / unmasked vst
    tq = _pick_q_tile(Sq, q_tile, align)

    def _working_set(t):
        kv = 2 * 2 * Skp * D * db                  # K + V slabs, double-buffered
        qio = 2 * 2 * t * D * db                   # Q in + O out, double-buffered
        wout = 2 * t * Skp * db                    # W out, double-buffered
        msk = 2 * t * Skp * db if has_mask else 0  # mask in, double-buffered
        tmp = 3 * t * Skp * 4                      # scores/exp f32 temporaries
        return kv + qio + wout + msk + tmp

    while _working_set(tq) > vmem_limit and tq > align:
        tq = max(align, (tq // 2 // align) * align)

    Sqp = _round_up(Sq, tq)
    n_q = Sqp // tq

    # ---- flatten / pad operands --------------------------------------------
    qf = q.reshape(BH, Sq, D)
    kf = k.reshape(BH, Sk, D)
    vf = v.reshape(BH, Sk, D)
    if Sqp != Sq:
        qf = jnp.pad(qf, ((0, 0), (0, Sqp - Sq), (0, 0)))
    if Skp != Sk:
        kf = jnp.pad(kf, ((0, 0), (0, Skp - Sk), (0, 0)))
        vf = jnp.pad(vf, ((0, 0), (0, Skp - Sk), (0, 0)))

    mask_args = []
    per_head_mask = False
    if has_mask:
        # Keep the mask in the input dtype; upcast only inside the kernel.
        m = jnp.asarray(attn_mask, dtype=dtype)
        while m.ndim < 4:
            m = m[None]
        if m.shape[0] * m.shape[1] == 1:
            m = jnp.broadcast_to(m, (1, 1, Sq, Sk)).reshape(1, Sq, Sk)
        else:
            m = jnp.broadcast_to(m, (B, H, Sq, Sk)).reshape(BH, Sq, Sk)
            per_head_mask = True
        if (Sqp != Sq) or (Skp != Sk):
            m = jnp.pad(m, ((0, 0), (0, Sqp - Sq), (0, Skp - Sk)))
        mask_args.append(m)

    # ---- pick grid ordering: keep the dominant stream resident --------------
    kv_bytes = 2 * Skp * D * db
    mask_tile_bytes = tq * Skp * db if (has_mask and not per_head_mask) else 0
    total_bh_outer = BH * kv_bytes + BH * n_q * mask_tile_bytes
    total_q_outer = BH * n_q * kv_bytes + n_q * mask_tile_bytes
    mask_outer = has_mask and not per_head_mask and total_q_outer < total_bh_outer

    if mask_outer:
        grid = (n_q, BH)
        q_axis = 0
        q_map = lambda j, i: (i, j, 0)
        kv_map = lambda j, i: (i, 0, 0)
        mask_map = lambda j, i: (0, j, 0)      # constant over inner axis -> resident
        out_map = lambda j, i: (i, j, 0)
    else:
        grid = (BH, n_q)
        q_axis = 1
        q_map = lambda i, j: (i, j, 0)
        kv_map = lambda i, j: (i, 0, 0)        # constant over inner axis -> resident
        if per_head_mask:
            mask_map = lambda i, j: (i, j, 0)
        else:
            mask_map = lambda i, j: (0, j, 0)
        out_map = lambda i, j: (i, j, 0)

    in_specs = [
        pl.BlockSpec((1, tq, D), q_map),     # q tile
        pl.BlockSpec((1, Skp, D), kv_map),   # k
        pl.BlockSpec((1, Skp, D), kv_map),   # v
    ]
    if has_mask:
        in_specs.append(pl.BlockSpec((1, tq, Skp), mask_map))

    # ---- advisory cost estimate ---------------------------------------------
    mask_bytes = ((BH if per_head_mask else 1) * Sqp * Skp * db) if has_mask else 0
    cost = pl.CostEstimate(
        flops=4 * BH * Sqp * Skp * D,                     # QK^T + PV
        transcendentals=BH * Sqp * Skp,                   # exp
        bytes_accessed=(BH * Sqp * D * db                 # q
                        + 2 * BH * Skp * D * db           # k, v
                        + mask_bytes
                        + BH * Sqp * D * db               # out
                        + BH * Sqp * Skp * db),           # weights
    )

    kernel = functools.partial(
        _sdp_kernel, causal=causal, offset=offset, q_tile=tq, q_axis=q_axis,
        sk_valid=Sk, has_mask=has_mask)

    out_f, w_f = pl.pallas_call(
        kernel,
        out_shape=(
            jax.ShapeDtypeStruct((BH, Sqp, D), dtype),
            jax.ShapeDtypeStruct((BH, Sqp, Skp), dtype),   # weights in input dtype
        ),
        grid_spec=pltpu.PrefetchScalarGridSpec(
            num_scalar_prefetch=0,
            grid=grid,
            in_specs=in_specs,
            out_specs=[
                pl.BlockSpec((1, tq, D), out_map),
                pl.BlockSpec((1, tq, Skp), out_map),
            ],
        ),
        compiler_params=pltpu.CompilerParams(
            dimension_semantics=("parallel", "parallel"),
            vmem_limit_bytes=vmem_limit,
        ),
        cost_estimate=cost,
    )(qf, kf, vf, *mask_args)

    out = out_f[:, :Sq, :].reshape(B, H, Sq, D)
    w = w_f[:, :Sq, :Sk].reshape(B, H, Sq, Sk)
    return out, w


def _reference(q, k, v, attn_mask, max_seq):
    """Pure-JAX reference mirroring the PyTorch forward exactly."""
    scores = jnp.einsum("bhqd,bhkd->bhqk",
                        q.astype(jnp.float32), k.astype(jnp.float32))
    Sq, Sk = q.shape[2], k.shape[2]
    if max_seq is not None:
        tril = jnp.tril(jnp.ones((max_seq, max_seq), dtype=bool))
        causal = tril[Sk - Sq:Sk, :Sk][None, None]
        scores = jnp.where(causal, scores, jnp.finfo(jnp.float32).min)
        if attn_mask is not None:
            scores = scores + attn_mask
    w = jax.nn.softmax(scores, axis=-1)
    return jnp.einsum("bhqk,bhkd->bhqd", w.astype(v.dtype), v), w


if __name__ == "__main__":
    B, H, S, D = 2, 4, 8, 32
    max_seq = 16  # max sequence length buffer (>= S)

    key = jax.random.PRNGKey(0)
    kq, kk, kv = jax.random.split(key, 3)
    q = jax.random.normal(kq, (B, H, S, D), dtype=jnp.float32)
    k = jax.random.normal(kk, (B, H, S, D), dtype=jnp.float32)
    v = jax.random.normal(kv, (B, H, S, D), dtype=jnp.float32)

    # Case 1: causal, no additive mask.
    out, attn_w = scaled_dot_product_selector(q, k, v, attn_mask=None, max_seq=max_seq)
    out = jax.block_until_ready(out)
    attn_w = jax.block_until_ready(attn_w)
    ref_out, ref_w = _reference(q, k, v, None, max_seq)
    assert jnp.allclose(out, ref_out, atol=1e-5, rtol=1e-5), "output mismatch (no mask)"
    assert jnp.allclose(attn_w, ref_w, atol=1e-5, rtol=1e-5), "weights mismatch (no mask)"

    # Case 2: causal with an additive padding mask (last 2 keys masked out).
    pad = jnp.zeros((1, 1, S, S), dtype=jnp.float32).at[..., -2:].set(-1e9)
    out2, attn_w2 = scaled_dot_product_selector(q, k, v, attn_mask=pad, max_seq=max_seq)
    out2 = jax.block_until_ready(out2)
    attn_w2 = jax.block_until_ready(attn_w2)
    ref_out2, ref_w2 = _reference(q, k, v, pad, max_seq)
    assert jnp.allclose(out2, ref_out2, atol=1e-5, rtol=1e-5), "output mismatch (mask)"
    assert jnp.allclose(attn_w2, ref_w2, atol=1e-5, rtol=1e-5), "weights mismatch (mask)"

    print("KERNEL_OK")
</pallas_src>

<mosaic_0001>
module attributes {stable_mosaic.version = 11 : i64} {
  func.func @_sdp_kernel(%arg0: i32, %arg1: i32, %arg2: memref<1x8x32xf32, #tpu.memory_space<vmem>>, %arg3: memref<1x128x32xf32, #tpu.memory_space<vmem>>, %arg4: memref<1x128x32xf32, #tpu.memory_space<vmem>>, %arg5: memref<1x8x32xf32, #tpu.memory_space<vmem>>, %arg6: memref<1x8x128xf32, #tpu.memory_space<vmem>>) attributes {dimension_semantics = [#tpu.dimension_semantics<parallel>, #tpu.dimension_semantics<parallel>], iteration_bounds = array<i64: 8, 1>, scalar_prefetch = 0 : i64, scratch_operands = 0 : i64, tpu.core_type = #tpu.core_type<tc>, window_params = [{transform_indices = @transform_0, window_bounds = array<i64: 1, 8, 32>}, {transform_indices = @transform_1, window_bounds = array<i64: 1, 128, 32>}, {transform_indices = @transform_2, window_bounds = array<i64: 1, 128, 32>}, {transform_indices = @transform_3, window_bounds = array<i64: 1, 8, 32>}, {transform_indices = @transform_4, window_bounds = array<i64: 1, 8, 128>}]} {
    %c0 = arith.constant 0 : index
    %c0_0 = arith.constant 0 : index
    %c0_1 = arith.constant 0 : index
    %0 = vector.load %arg2[%c0, %c0_0, %c0_1] : memref<1x8x32xf32, #tpu.memory_space<vmem>>, vector<1x8x32xf32>
    %1 = vector.shape_cast %0 : vector<1x8x32xf32> to vector<8x32xf32>
    %c0_2 = arith.constant 0 : index
    %c0_3 = arith.constant 0 : index
    %c0_4 = arith.constant 0 : index
    %2 = vector.load %arg3[%c0_2, %c0_3, %c0_4] : memref<1x128x32xf32, #tpu.memory_space<vmem>>, vector<1x128x32xf32>
    %3 = vector.shape_cast %2 : vector<1x128x32xf32> to vector<128x32xf32>
    %c0_5 = arith.constant 0 : index
    %c0_6 = arith.constant 0 : index
    %c0_7 = arith.constant 0 : index
    %4 = vector.load %arg4[%c0_5, %c0_6, %c0_7] : memref<1x128x32xf32, #tpu.memory_space<vmem>>, vector<1x128x32xf32>
    %5 = vector.shape_cast %4 : vector<1x128x32xf32> to vector<128x32xf32>
    %cst = arith.constant dense<0.000000e+00> : vector<8x128xf32>
    %6 = tpu.matmul %1, %3, %cst {dimension_numbers = #tpu.dot_dimension_numbers<[1], [1], [0], [0], [0, 0, 1, 0], [], []>} : vector<8x32xf32>, vector<128x32xf32>, vector<8x128xf32> -> vector<8x128xf32>
    %c8_i32 = arith.constant 8 : i32
    %7 = arith.muli %arg1, %c8_i32 : i32
    %8 = tpu.iota {dimensions = array<i32: 0>} : vector<8x128xi32>
    %9 = vector.broadcast %7 : i32 to vector<8x128xi32>
    %10 = arith.addi %8, %9 : vector<8x128xi32>
    %11 = tpu.iota {dimensions = array<i32: 1>} : vector<8x128xi32>
    %c0_i32 = arith.constant 0 : i32
    %12 = vector.broadcast %c0_i32 : i32 to vector<8x128xi32>
    %13 = arith.addi %10, %12 : vector<8x128xi32>
    %14 = arith.cmpi sle, %11, %13 : vector<8x128xi32>
    %15 = tpu.iota {dimensions = array<i32: 1>} : vector<8x128xi32>
    %c8_i32_8 = arith.constant 8 : i32
    %16 = vector.broadcast %c8_i32_8 : i32 to vector<8x128xi32>
    %17 = arith.cmpi slt, %15, %16 : vector<8x128xi32>
    %18 = arith.andi %14, %17 : vector<8x128xi1>
    %cst_9 = arith.constant -3.40282347E+38 : f32
    %19 = vector.broadcast %cst_9 : f32 to vector<8x128xf32>
    %20 = arith.select %18, %6, %19 : vector<8x128xi1>, vector<8x128xf32>
    %cst_10 = arith.constant dense<0xFF800000> : vector<8xf32>
    %21 = vector.multi_reduction <maximumf>, %20, %cst_10 [1] : vector<8x128xf32> to vector<8xf32>
    %22 = vector.shape_cast %21 : vector<8xf32> to vector<8x1xf32>
    %23 = vector.broadcast %22 : vector<8x1xf32> to vector<8x128xf32>
    %24 = arith.subf %20, %23 : vector<8x128xf32>
    %25 = math.exp %24 : vector<8x128xf32>
    %cst_11 = arith.constant dense<0.000000e+00> : vector<8xf32>
    %26 = vector.multi_reduction <add>, %25, %cst_11 [1] : vector<8x128xf32> to vector<8xf32>
    %27 = vector.shape_cast %26 : vector<8xf32> to vector<8x1xf32>
    %28 = tpu.reciprocal %27 : vector<8x1xf32> -> vector<8x1xf32>
    %29 = vector.broadcast %28 : vector<8x1xf32> to vector<8x128xf32>
    %30 = arith.mulf %25, %29 : vector<8x128xf32>
    %c0_12 = arith.constant 0 : index
    %c0_13 = arith.constant 0 : index
    %c0_14 = arith.constant 0 : index
    %31 = vector.load %arg6[%c0_12, %c0_13, %c0_14] : memref<1x8x128xf32, #tpu.memory_space<vmem>>, vector<1x8x128xf32>
    %32 = vector.shape_cast %31 : vector<1x8x128xf32> to vector<8x128xf32>
    %33 = vector.shape_cast %30 : vector<8x128xf32> to vector<1x8x128xf32>
    tpu.vector_store %arg6[%c0_12, %c0_13, %c0_14], %33 {strides = array<i32>} : memref<1x8x128xf32, #tpu.memory_space<vmem>>, vector<1x8x128xf32>,
    %cst_15 = arith.constant dense<0.000000e+00> : vector<8x32xf32>
    %34 = tpu.matmul %30, %5, %cst_15 {dimension_numbers = #tpu.dot_dimension_numbers<[1], [0], [0], [1], [0, 0, 1, 1], [], []>} : vector<8x128xf32>, vector<128x32xf32>, vector<8x32xf32> -> vector<8x32xf32>
    %c0_16 = arith.constant 0 : index
    %c0_17 = arith.constant 0 : index
    %c0_18 = arith.constant 0 : index
    %35 = vector.load %arg5[%c0_16, %c0_17, %c0_18] : memref<1x8x32xf32, #tpu.memory_space<vmem>>, vector<1x8x32xf32>
    %36 = vector.shape_cast %35 : vector<1x8x32xf32> to vector<8x32xf32>
    %37 = vector.shape_cast %34 : vector<8x32xf32> to vector<1x8x32xf32>
    tpu.vector_store %arg5[%c0_16, %c0_17, %c0_18], %37 {strides = array<i32>} : memref<1x8x32xf32, #tpu.memory_space<vmem>>, vector<1x8x32xf32>,
    return
  }
  func.func @transform_0(%arg0: i32, %arg1: i32) -> (i32, i32, i32) {
    %c0_i32 = arith.constant 0 : i32
    %c0_i32_0 = arith.constant 0 : i32
    return %arg0, %arg1, %c0_i32 : i32, i32, i32
  }
  func.func @transform_1(%arg0: i32, %arg1: i32) -> (i32, i32, i32) {
    %c0_i32 = arith.constant 0 : i32
    %c0_i32_0 = arith.constant 0 : i32
    %c0_i32_1 = arith.constant 0 : i32
    return %arg0, %c0_i32, %c0_i32_0 : i32, i32, i32
  }
  func.func @transform_2(%arg0: i32, %arg1: i32) -> (i32, i32, i32) {
    %c0_i32 = arith.constant 0 : i32
    %c0_i32_0 = arith.constant 0 : i32
    %c0_i32_1 = arith.constant 0 : i32
    return %arg0, %c0_i32, %c0_i32_0 : i32, i32, i32
  }
  func.func @transform_3(%arg0: i32, %arg1: i32) -> (i32, i32, i32) {
    %c0_i32 = arith.constant 0 : i32
    %c0_i32_0 = arith.constant 0 : i32
    return %arg0, %arg1, %c0_i32 : i32, i32, i32
  }
  func.func @transform_4(%arg0: i32, %arg1: i32) -> (i32, i32, i32) {
    %c0_i32 = arith.constant 0 : i32
    %c0_i32_0 = arith.constant 0 : i32
    return %arg0, %arg1, %c0_i32 : i32, i32, i32
  }
}

</mosaic_0001>

<bundles_post_ra>
// kernel: tpu_custom_call.1
= control target key start
LH: loop header
LB: loop body
LE: loop exit
PB: predicated region body
PF: predicated region fallthrough
CT: control target
= control target key end

     0   :  { %10 = vsyncpa [#allocation3], 0  ;;  %s1022_s0 = inlined_call_operand.vmem [shape: f32[8,8,32], index: 0, kind: input, shape index: {}]   ;;  %s1023_s1 = inlined_call_operand.vmem [shape: f32[8,128,32], index: 1, kind: input, shape index: {}]   ;;  %s1024_s2 = inlined_call_operand.vmem [shape: f32[8,128,32], index: 2, kind: input, shape index: {}]   ;;  %s1025_s3 = inlined_call_operand.hbm [shape: f32[8,8,32], index: 3, kind: output, shape index: {0}]   ;;  %s1026_s4 = inlined_call_operand.hbm [shape: f32[8,8,128], index: 4, kind: output, shape index: {1}]  }
   0x1   :  { %12 = vsyncpa [#allocation3 + $0x1], 0 }
   0x2   :  { %13 = vsyncpa [#allocation5], 0 }
   0x3   :  { %15 = vsyncpa [#allocation5 + $0x1], 0  ;;  %s835_s15 = smov 0   ;;  %s837_s16 = smov 0  }
   0x4   :  { %s839_s17 = smov 0   ;;  %s841_s18 = smov 0  }
   0x5   :  { %s843_s19 = smov 0   ;;  %s845_s20 = smov 0  }
   0x6 LB: > { %s597_s21 = sadd.s32 4294967295, %s808_s20   ;;  %s598_s22 = sadd.s32 4294967294, %s808_s20   ;;  %s808_s20 = sphi %s845_s20, %s21_s20   ;;  %s804_s19 = sphi %s843_s19, %s1033_s19   ;;  %s800_s18 = sphi %s841_s18, %s1032_s18   ;;  %s796_s17 = sphi %s839_s17, %s1031_s17   ;;  %s792_s16 = sphi %s837_s16, %s1030_s16   ;;  %s788_s15 = sphi %s835_s15, %s1029_s15  }
   0x7   : > { %s33_s23 = sadd.s32 1, %s804_s19  ;;  %s122_s24 = sadd.s32 1, %s796_s17 }
   0x8   : > { %p35_p0 = scmp.ge.s32.totalorder %s33_s23, 8  ;;  %p132_p1 = scmp.ne.s32.totalorder %s796_s17, %s792_s16 }
   0x9   : > { %p133_p2 = scmp.eq.s32.totalorder %s597_s21, 7  ;;  %p138_p3 = scmp.ne.s32.totalorder %s792_s16, %s788_s15 }
   0xa   : > { %s1035_s23 = smov (%p35_p0, %s33_s23), 0  ;;  %p139_p5 = scmp.eq.s32.totalorder %s598_s22, 7 }
   0xb   : > { %p875_p4 = por %p133_p2, %p132_p1  ;;  %s117_s26 = ssub.s32 %s804_s19, %s1035_s23 }
   0xc   : > { %p601_p6 = scmp.ge.s32.totalorder %s808_s20, 1  ;;  %p120_p7 = scmp.eq.s32.totalorder %s117_s26, 0 }
   0xd   : > { %p882_p8 = por %p139_p5, %p138_p3  ;;  %p211_p9 = scmp.lt.s32.totalorder %s808_s20, 9 }
   0xe   : > { %s888_s28 = scalar_select %p120_p7, %s796_s17, %s122_s24  }
   0xf   : > { %p212_p10 = pnand %p601_p6, %p211_p9 }
  0x10   : > { %p254_p11 = scmp.lt.s32.totalorder (!%p212_p10), %s800_s18, 7  ;;  %s963_s21 = sand.u32 (!%p212_p10), 1, %s792_s16  }
  0x11   : > { %215 = sbr.rel (%p212_p10) target bundleno = 608 (0x260), region = 32  ;;  %s602_s22 = sshll.u32 (!%p212_p10), %s963_s21, 3 }
  0x12   : > { %s628_s24 = sshll.u32 (!%p212_p10), %s800_s18, 3  ;;  %s253_s5 = scalar_lea.vmem (!%p212_p10), [#allocation4], %s602_s22 }
  0x13   : > { %s465_s6 = sshll.u32 (!%p212_p10), %s253_s5, 4  ;;  %s718_s12 = scalar_lea.hbm (!%p212_p10), %s1026_s4, 64  ;;  %s466_s6 = int_to_ptr.vmem [resolvable:$true] %s465_s6 }
  0x16   : > { %s892_s29 = scalar_select %p254_p11, %s800_s18, 7  ;;  %vm304_vm0 = vcmask 261120   ;;  %v377_v17 = vlaneseq }
  0x18   : > { %s632_s30 = sshll.u32 %s892_s29, 7  ;;  %s604_s8 = sshll.u32 %s892_s29, 3  ;;  %v378_v18 = vshrl.u32 %v377_v17, 7  ;;  %v382_v19 = vand.u32 127, %v377_v17 }
  0x19   : > { %s900_s7 = scalar_lea.vmem %s1023_s1, %s632_s30  ;;  %s260_s11 = scalar_lea.vmem %s1022_s0, %s604_s8 }
  0x1a   : > { %v287_v0 = vld [vmem:[%s900_s7 + $0x78] sm:$0xff]  ;;  %v286_v1 = vld [vmem:[%s900_s7 + $0x70] sm:$0xff]  ;;  %v285_v2 = vld [vmem:[%s900_s7 + $0x68] sm:$0xff]  ;;  %vm383_vm1 = vcmp.le.s32.totalorder %v382_v19, %v378_v18  ;;  %vm384_vm2 = vcmp.lt.s32.totalorder %v382_v19, 8  ;;  %s944_s14 = scalar_lea.vmem %s1024_s2, %s632_s30  ;;  %s463_s30 = scalar_lea.hbm %s1026_s4, %s628_s24 }
  0x1b   : > { %609 = vmatpush.xpose.msk.msra.mxu0 %vm304_vm0, %v287_v0  ;;  %v284_v3 = vld [vmem:[%s900_s7 + $0x60] sm:$0xff]  ;;  %v283_v4 = vld [vmem:[%s900_s7 + $0x58] sm:$0xff]  ;;  %v282_v5 = vld [vmem:[%s900_s7 + $0x50] sm:$0xff]  ;;  %s437_s8 = scalar_lea.sflag [#allocation5], %s963_s21 }
  0x1c   : > { %v281_v6 = vld [vmem:[%s900_s7 + $0x48] sm:$0xff]  ;;  %v280_v7 = vld [vmem:[%s900_s7 + $0x40] sm:$0xff]  ;;  %v279_v8 = vld [vmem:[%s900_s7 + $0x38] sm:$0xff] }
  0x1d   : > { %v278_v9 = vld [vmem:[%s900_s7 + $0x30] sm:$0xff]  ;;  %v277_v10 = vld [vmem:[%s900_s7 + $0x28] sm:$0xff]  ;;  %v276_v11 = vld [vmem:[%s900_s7 + $0x20] sm:$0xff] }
  0x1e   : > { %v275_v12 = vld [vmem:[%s900_s7 + $0x18] sm:$0xff]  ;;  %v274_v13 = vld [vmem:[%s900_s7 + $0x10] sm:$0xff]  ;;  %v273_v14 = vld [vmem:[%s900_s7 + $0x8] sm:$0xff] }
  0x1f   : > { %610 = vmatpush.xpose.msk.msra.mxu0 %vm304_vm0, %v286_v1  ;;  %v272_v15 = vld [vmem:[%s900_s7] sm:$0xff]  ;;  %vm385_vm3 = vmand %vm383_vm1, %vm384_vm2  ;;  %v303_v22 = vld [vmem:[%s944_s14 + $0x78] sm:$0xff]  ;;  %s467_s7 = sshll.u32 %s463_s30, 4  ;;  %s468_s7 = int_to_ptr.hbm [resolvable:$true] %s467_s7 }
  0x20   : > { %v271_v16 = vld [vmem:[%s260_s11] sm:$0xff]  ;;  %v302_v23 = vld [vmem:[%s944_s14 + $0x70] sm:$0xff]  ;;  %410 = vmatpush.msra.mxu1 %v303_v22  ;;  %v301_v24 = vld [vmem:[%s944_s14 + $0x68] sm:$0xff]  ;;  %s712_s9 = sshra.s32 %s468_s7, 4  ;;  %s713_s9 = int_to_ptr.hbm [resolvable:$true] %s712_s9 }
  0x21   : > { %v300_v25 = vld [vmem:[%s944_s14 + $0x60] sm:$0xff]  ;;  %v299_v26 = vld [vmem:[%s944_s14 + $0x58] sm:$0xff]  ;;  %v298_v27 = vld [vmem:[%s944_s14 + $0x50] sm:$0xff]  ;;  %s714_s18 = scalar_lea.hbm %s713_s9, 8  ;;  %p719_p1 = scmp.lt.s32.totalorder %s713_s9, %s1026_s4 }
  0x22   : > { %411 = vmatpush.msra.mxu1 %v302_v23  ;;  %v297_v32 = vld [vmem:[%s944_s14 + $0x48] sm:$0xff]  ;;  %v296_v33 = vld [vmem:[%s944_s14 + $0x40] sm:$0xff]  ;;  %v295_v34 = vld [vmem:[%s944_s14 + $0x38] sm:$0xff]  ;;  %p715_p12 = scmp.ne.s32.totalorder %s713_s9, %s714_s18  ;;  %p720_p2 = scmp.lt.s32.totalorder %s718_s12, %s714_s18 }
  0x23   : > { %611 = vmatpush.xpose.msk.msra.mxu0 %vm304_vm0, %v285_v2  ;;  %v294_v35 = vld [vmem:[%s944_s14 + $0x30] sm:$0xff]  ;;  %v293_v36 = vld [vmem:[%s944_s14 + $0x28] sm:$0xff]  ;;  %v292_v37 = vld [vmem:[%s944_s14 + $0x20] sm:$0xff] }
  0x24   : > { %412 = vmatpush.msra.mxu1 %v301_v24  ;;  %v291_v38 = vld [vmem:[%s944_s14 + $0x18] sm:$0xff]  ;;  %v290_v39 = vld [vmem:[%s944_s14 + $0x10] sm:$0xff]  ;;  %v289_v40 = vld [vmem:[%s944_s14 + $0x8] sm:$0xff]  ;;  %p716_p13 = pnand %p715_p12, %p875_p4  ;;  %p721_p3 = por %p720_p2, %p719_p1 }
  0x25   : > { %v288_v41 = vld [vmem:[%s944_s14] sm:$0xff] }
  0x26   : > { %413 = vmatpush.msra.mxu1 %v300_v25  ;;  %p717_p0 = pneg %p716_p13 }
  0x27   : > { %612 = vmatpush.xpose.msk.msra.mxu0 %vm304_vm0, %v284_v3 }
  0x28   : > { %414 = vmatpush.msra.mxu1 %v299_v26  ;;  %p722_p5 = pnand %p721_p3, %p717_p0 }
  0x2a   : > { %415 = vmatpush.msra.mxu1 %v298_v27 }
  0x2b   : > { %613 = vmatpush.xpose.msk.msra.mxu0 %vm304_vm0, %v283_v4 }
  0x2c   : > { %416 = vmatpush.msra.mxu1 %v297_v32 }
  0x2e   : > { %417 = vmatpush.msra.mxu1 %v296_v33 }
  0x2f   : > { %614 = vmatpush.xpose.msk.msra.mxu0 %vm304_vm0, %v282_v5 }
  0x30   : > { %418 = vmatpush.msra.mxu1 %v295_v34 }
  0x32   : > { %419 = vmatpush.msra.mxu1 %v294_v35 }
  0x33   : > { %615 = vmatpush.xpose.msk.msra.mxu0 %vm304_vm0, %v281_v6 }
  0x34   : > { %420 = vmatpush.msra.mxu1 %v293_v36 }
  0x36   : > { %421 = vmatpush.msra.mxu1 %v292_v37 }
  0x37   : > { %616 = vmatpush.xpose.msk.msra.mxu0 %vm304_vm0, %v280_v7 }
  0x38   : > { %422 = vmatpush.msra.mxu1 %v291_v38 }
  0x3a   : > { %423 = vmatpush.msra.mxu1 %v290_v39 }
  0x3b   : > { %617 = vmatpush.xpose.msk.msra.mxu0 %vm304_vm0, %v279_v8 }
  0x3c   : > { %424 = vmatpush.msra.mxu1 %v289_v40 }
  0x3e   : > { %425 = vmatpush.msra.mxu1 %v288_v41 }
  0x3f   : > { %618 = vmatpush.xpose.msk.msra.mxu0 %vm304_vm0, %v278_v9 }
  0x43   : > { %619 = vmatpush.xpose.msk.msra.mxu0 %vm304_vm0, %v277_v10 }
  0x47   : > { %620 = vmatpush.xpose.msk.msra.mxu0 %vm304_vm0, %v276_v11 }
  0x4b   : > { %621 = vmatpush.xpose.msk.msra.mxu0 %vm304_vm0, %v275_v12 }
  0x4f   : > { %622 = vmatpush.xpose.msk.msra.mxu0 %vm304_vm0, %v274_v13 }
  0x53   : > { %623 = vmatpush.xpose.msk.msra.mxu0 %vm304_vm0, %v273_v14 }
  0x57   : > { %624 = vmatpush.xpose.msk.msra.mxu0 %vm304_vm0, %v272_v15 }
  0x5a   : > { %625 = vmatmul.msk.f32.vlgmr.msra.gmra.mxu0 %vm304_vm0, %v271_v16 }
  0xd7   : > { %v373_v20 = vpop.f32.mrf.mxu0 }
  0xd8   : > { %v386_v21 = vsel %vm385_vm3, %v373_v20, -3.4028235e+38 }
  0xd9   : > { %387 = vmax.xlane.f32.xlu0 %v386_v21 }
 0x14c   : > { %v388_v28 = vpop.xlane.xlu0 %387 }
 0x14d   : > { %v389_v29 = vsub.f32 %v386_v21, %v388_v28 }
 0x14f   : > { %v390_v30 = vmul.f32 1.442695, %v389_v29 }
 0x151   : > { %694 = vpow2.f32 %v390_v30 }
 0x157   : > { %v695_v31 = vpop.eup %694 }
 0x158   : > { %392 = vadd.xlane.f32.xlu0 %v695_v31 }
 0x1cb   : > { %v393_v42 = vpop.xlane.xlu0 %392 }
 0x1cc   : > { %696 = vrcp.f32 %v393_v42  ;;  %v405_v46 = vand.u32 2147483648, %v393_v42  ;;  %v403_v48 = vand.u32 2147483647, %v393_v42  ;;  %vm399_vm5 = vweird.f32 %v393_v42 }
 0x1ce   : > { %v406_v50 = vor.u32 1.1754944e-38, %v405_v46  ;;  %vm404_vm7 = vcmp.eq.f32.partialorder %v403_v48, 8.507059e+37 }
 0x1d2   : > { %v697_v43 = vpop.eup %696 }
 0x1d3   : > { %v395_v44 = vmul.f32 %v697_v43, %v393_v42  ;;  %vm400_vm4 = vweird.f32 %v697_v43 }
 0x1d4   : > { %vm401_vm6 = vmor %vm399_vm5, %vm400_vm4 }
 0x1d5   : > { %v396_v45 = vsub.f32 1.0, %v395_v44 }
 0x1d7   : > { %v397_v47 = vmul.f32 %v697_v43, %v396_v45 }
 0x1d9   : > { %v398_v49 = vadd.f32 %v697_v43, %v397_v47 }
 0x1db   : > { %v402_v51 = vsel %vm401_vm6, %v697_v43, %v398_v49 }
 0x1dc   : > { %v407_v52 = vsel %vm404_vm7, %v406_v50, %v402_v51 }
 0x1dd   : > { %v408_v53 = vmul.f32 %v695_v31, %v407_v52 }
 0x1df   : > { %426 = vmatmul.f32.vlgmr.msra.gmra.mxu1 %v408_v53  ;;  %409 = vst [vmem:[%s253_s5] sm:$0xff] %v408_v53 }
 0x1e0   : > { %725 = shalt.err (!%p722_p5)
}
 0x1e1   : > { %635 = dma.vmem_to_hbm [thread:$0]  (%p875_p4), %s466_s6, 128, %s468_s7, %s437_s8  }
 0x1e2   : > { %s448_s30 = scalar_lea.hbm %s1025_s3, %s628_s24  ;;  %s246_s5 = scalar_lea.vmem [#allocation2], %s602_s22 }
 0x1e3   : > { %s450_s10 = sshll.u32 %s246_s5, 4  ;;  %s452_s11 = sshll.u32 %s448_s30, 4  ;;  %s451_s10 = int_to_ptr.vmem [resolvable:$true] %s450_s10  ;;  %s453_s11 = int_to_ptr.hbm [resolvable:$true] %s452_s11 }
 0x1e4   : > { %s432_s9 = scalar_lea.sflag [#allocation3], %s963_s21  ;;  %s740_s18 = sshra.s32 %s453_s11, 4  ;;  %s741_s18 = int_to_ptr.hbm [resolvable:$true] %s740_s18 }
 0x1e5   : > { %s742_s12 = scalar_lea.hbm %s741_s18, 8  ;;  %s746_s24 = scalar_lea.hbm %s1025_s3, 64 }
 0x1e6   : > { %p743_p6 = scmp.ne.s32.totalorder %s741_s18, %s742_s12  ;;  %p747_p10 = scmp.lt.s32.totalorder %s741_s18, %s1025_s3 }
 0x1e7   : > { %p748_p11 = scmp.lt.s32.totalorder %s746_s24, %s742_s12 }
 0x1e8   : > { %p744_p7 = pnand %p743_p6, %p875_p4 }
 0x1e9   : > { %p749_p12 = por %p748_p11, %p747_p10 }
 0x1ea   : > { %p745_p9 = pneg %p744_p7 }
 0x1ec   : > { %p750_p13 = pnand %p749_p12, %p745_p9 }
 0x25c   : > { %v427_v54 = vpop.f32.mrf.mxu1 }
 0x25d   : > { %430 = vst.msk [vmem:[%s246_s5] sm:$0xff] %vm304_vm0, %v427_v54 }
 0x25e   : > { %753 = shalt.err (!%p750_p13)
}
 0x25f   : > { %634 = dma.vmem_to_hbm [thread:$0]  (%p875_p4), %s451_s10, 128, %s453_s11, %s432_s9  }
 0x260 PF: > { %p645_p0 = scmp.ge.s32.totalorder %s808_s20, 2  ;;  %s479_s21 = sand.u32 1, %s788_s15  }
 0x261   : > { %s480_s13 = scalar_lea.sflag [#allocation3], %s479_s21 }
 0x262   : > { %p639_p1 = pnand %p645_p0, %p882_p8 }
 0x264   : > { %p640_p2 = pneg %p639_p1 }
 0x266   : > { %779 = dma.done.wait (%p640_p2), %s480_s13, 128  }
 0x267   : > { %781 = vsyncadd (%p640_p2), %s480_s13, 4294967168  ;;  %s490_s14 = scalar_lea.sflag [#allocation5], %s479_s21 }
 0x268   : > { %783 = dma.done.wait (%p640_p2), %s490_s14, 128  }
 0x269   : > { %785 = vsyncadd (%p640_p2), %s490_s14, 4294967168  ;;  %s21_s20 = sadd.s32 1, %s808_s20   ;;  %s1029_s15 = smov %s792_s16 }
 0x26a   : > { %p18_p3 = scmp.ge.s32.totalorder %s21_s20, 10   ;;  %s1030_s16 = smov %s796_s17 }
 0x26b   : > { %s1031_s17 = smov %s888_s28  ;;  %s1032_s18 = smov %s804_s19 }
 0x26c   : > { %s1033_s19 = smov %s1035_s23  ;;  %20 = sbr.rel (!%p18_p3) target bundleno = 6 (0x6), region = 90 }
 0x271   :  { %496 = vsyncpa [#allocation3], 1 }
 0x272   :  { %498 = vsyncpa [#allocation3 + $0x1], 1 }
 0x273   :  { %499 = vsyncpa [#allocation5], 1 }
 0x274   :  { %501 = vsyncpa [#allocation5 + $0x1], 1 }

</bundles_post_ra>
